<compile_context>
chip_gen: v7x
topology: tpu7x:2x2x1
jax: 0.10.0
libtpu: 0.0.40
codegen_flags: <defaults>
</compile_context>

<pallas_src>
import math

import numpy as np
import jax
import jax.numpy as jnp
from jax.experimental import pallas as pl
from jax.experimental.pallas import tpu as pltpu

_HIGHEST = jax.lax.Precision.HIGHEST


def _cmha_kernel(x_ref, a_ref, wc_ref, bc_ref, o_ref, xwc_ref):
    """Grid = (batch, row_tile).

    x_ref   : (S, E)   tokens of this batch (constant index over row tiles)
    a_ref   : (tq, S)  rows of the causal prefix-mean operator
    wc_ref  : (E, E)   fused Wv^T @ Wp^T
    bc_ref  : (1, E)   fused bias  bv @ Wp^T + bp
    o_ref   : (tq, E)  output rows
    xwc_ref : (S, E)   f32 scratch: x @ Wc, computed once per batch
    """
    @pl.when(pl.program_id(1) == 0)
    def _():
        xwc_ref[...] = jnp.dot(x_ref[...], wc_ref[...],
                               preferred_element_type=jnp.float32,
                               precision=_HIGHEST)

    y = jnp.dot(a_ref[...], xwc_ref[...],
                preferred_element_type=jnp.float32,
                precision=_HIGHEST) + bc_ref[...]
    o_ref[...] = y.astype(o_ref.dtype)


def _choose_row_tile(S):
    # Full-S rows for modest sequences; tile long sequences so the (tq, S)
    # A block + (S, E) scratch stay inside v7x's 64 MiB VMEM.
    if S <= 1024:
        return S
    for tq in (512, 256, 128, 64, 32, 16, 8):
        if S % tq == 0:
            return tq
    return S


def cmha_forward(x, cnn_img, params, n_head):
    """x: (B, S, E), cnn_img: (B, 1, E).  Matches PyTorch cmha.forward."""
    B, S, E = x.shape
    assert E % n_head == 0
    wqk, bqk, wv, bv, wp, bp = params
    # q/k come from one CnnImg token broadcast over the sequence -> uniform
    # causal softmax -> qkLayer / CnnImg cannot affect the output (exact).
    del cnn_img, wqk, bqk

    # Fused projection (exact by associativity).
    wc = jnp.matmul(wv.T, wp.T, precision=_HIGHEST)                  # (E, E)
    bc = (jnp.matmul(bv.reshape(1, E), wp.T, precision=_HIGHEST)
          + bp.reshape(1, E))                                        # (1, E)

    # Per-batch causal prefix-mean operator: A[i, j] = 1/(i+1) for j <= i.
    tri = np.tril(np.ones((S, S), np.float32))
    a_op = jnp.asarray(tri / np.arange(1, S + 1, dtype=np.float32)[:, None])

    tq = _choose_row_tile(S)
    n_row_tiles = S // tq
    x2 = x.reshape(B * S, E)   # wrapper-side layout plumbing only

    # VMEM budget (f32): double-buffered x/A/Wc/bc/out + the xWc scratch.
    need = 4 * (2 * S * E + 2 * tq * S + 2 * E * E + 2 * E + 2 * tq * E + S * E)
    vmem_limit = int(min(max(2 * need, 32 * 1024 * 1024), 64 * 1024 * 1024))

    # NOTE: for production shapes, E should be a multiple of 128 (lane-dense
    # stores / full MXU width); at the demo E=32 the block equals the full
    # array dim so it lowers fine but is lane-masked.
    out2 = pl.pallas_call(
        _cmha_kernel,
        out_shape=jax.ShapeDtypeStruct((B * S, E), x.dtype),
        grid_spec=pltpu.PrefetchScalarGridSpec(
            num_scalar_prefetch=0,
            grid=(B, n_row_tiles),
            in_specs=[
                pl.BlockSpec((S, E), lambda b, r: (b, 0)),    # x (per batch)
                pl.BlockSpec((tq, S), lambda b, r: (r, 0)),   # A row tile
                pl.BlockSpec((E, E), lambda b, r: (0, 0)),    # Wc
                pl.BlockSpec((1, E), lambda b, r: (0, 0)),    # bc
            ],
            out_specs=pl.BlockSpec(
                (tq, E), lambda b, r: (b * n_row_tiles + r, 0)),
            scratch_shapes=[pltpu.VMEM((S, E), jnp.float32)],
        ),
        compiler_params=pltpu.CompilerParams(
            dimension_semantics=("parallel", "arbitrary"),
            vmem_limit_bytes=vmem_limit,
        ),
    )(x2, a_op, wc, bc)

    return out2.reshape(B, S, E)


def cmha_reference(x, cnn_img, wqk, bqk, wv, bv, wp, bp, n_head):
    """Pure-JAX mirror of the full PyTorch forward (qk linear, head split,
    causal softmax attention, projection) — verification only."""
    B, S, E = x.shape
    qk = jnp.matmul(cnn_img, wqk.T, precision=_HIGHEST) + bqk    # (B, 1, 2E)
    v = jnp.matmul(x, wv.T, precision=_HIGHEST) + bv             # (B, S, E)
    qk = jnp.tile(qk, (1, S, 1))                                 # (B, S, 2E)
    q, k = qk[..., :E], qk[..., E:]
    Hh = E // n_head

    def split(t):
        return t.reshape(B, S, Hh, n_head).transpose(0, 2, 1, 3)  # (B,Hh,S,nH)

    q, k, v = split(q), split(k), split(v)
    scale = 1.0 / math.sqrt(n_head)
    s = jnp.einsum('bhqd,bhkd->bhqk', q, k, precision=_HIGHEST) * scale
    mask = jnp.tril(jnp.ones((S, S), dtype=bool))
    s = jnp.where(mask, s, -jnp.inf)
    att = jax.nn.softmax(s, axis=-1)
    y = jnp.einsum('bhqk,bhkd->bhqd', att, v, precision=_HIGHEST)
    y = y.transpose(0, 2, 1, 3).reshape(B, S, E)
    return jnp.matmul(y, wp.T, precision=_HIGHEST) + bp


if __name__ == "__main__":
    B, S, E, n_head = 2, 8, 32, 4   # blockSize >= S implied by the causal mask
    key = jax.random.PRNGKey(0)
    keys = jax.random.split(key, 8)

    x = jax.random.normal(keys[0], (B, S, E), jnp.float32)
    cnn_img = jax.random.normal(keys[1], (B, 1, E), jnp.float32)

    def lin_init(kw, kb, out_f, in_f):
        bound = 1.0 / math.sqrt(in_f)
        w = jax.random.uniform(kw, (out_f, in_f), jnp.float32, -bound, bound)
        b = jax.random.uniform(kb, (out_f,), jnp.float32, -bound, bound)
        return w, b

    wqk, bqk = lin_init(keys[2], keys[3], 2 * E, E)
    wv, bv = lin_init(keys[4], keys[5], E, E)
    wp, bp = lin_init(keys[6], keys[7], E, E)

    # jit so A / Wc / bc construction constant-folds instead of being
    # re-uploaded per call (review item: hoist host-side prep).
    fwd = jax.jit(cmha_forward, static_argnums=(3,))
    out = fwd(x, cnn_img, (wqk, bqk, wv, bv, wp, bp), n_head)
    out = jax.block_until_ready(out)

    ref = cmha_reference(x, cnn_img, wqk, bqk, wv, bv, wp, bp, n_head)
    assert out.shape == (B, S, E)
    err = float(jnp.max(jnp.abs(out - ref)))
    assert jnp.allclose(out, ref, atol=5e-3, rtol=5e-3), f"max err {err}"
    print("KERNEL_OK")
</pallas_src>

<mosaic_0001>
module attributes {stable_mosaic.version = 11 : i64} {
  func.func @_cmha_kernel(%arg0: i32, %arg1: i32, %arg2: memref<8x32xf32, #tpu.memory_space<vmem>>, %arg3: memref<8x8xf32, #tpu.memory_space<vmem>>, %arg4: memref<32x32xf32, #tpu.memory_space<vmem>>, %arg5: memref<1x32xf32, #tpu.memory_space<vmem>>, %arg6: memref<8x32xf32, #tpu.memory_space<vmem>>, %arg7: memref<8x32xf32, #tpu.memory_space<vmem>>) attributes {dimension_semantics = [#tpu.dimension_semantics<parallel>, #tpu.dimension_semantics<arbitrary>], iteration_bounds = array<i64: 2, 1>, scalar_prefetch = 0 : i64, scratch_operands = 1 : i64, tpu.core_type = #tpu.core_type<tc>, window_params = [{transform_indices = @transform_0, window_bounds = array<i64: 8, 32>}, {transform_indices = @transform_1, window_bounds = array<i64: 8, 8>}, {pipeline_mode = #tpu.pipeline_mode<synchronous>, transform_indices = @transform_2, window_bounds = array<i64: 32, 32>}, {pipeline_mode = #tpu.pipeline_mode<synchronous>, transform_indices = @transform_3, window_bounds = array<i64: 1, 32>}, {transform_indices = @transform_4, window_bounds = array<i64: 8, 32>}]} {
    %c0_i32 = arith.constant 0 : i32
    %0 = arith.cmpi eq, %arg1, %c0_i32 : i32
    %1 = arith.extui %0 : i1 to i32
    %c0_i32_0 = arith.constant 0 : i32
    %2 = arith.cmpi ne, %1, %c0_i32_0 : i32
    scf.if %2 {
      %c0_8 = arith.constant 0 : index
      %c0_9 = arith.constant 0 : index
      %10 = vector.load %arg2[%c0_8, %c0_9] : memref<8x32xf32, #tpu.memory_space<vmem>>, vector<8x32xf32>
      %c0_10 = arith.constant 0 : index
      %c0_11 = arith.constant 0 : index
      %11 = vector.load %arg4[%c0_10, %c0_11] : memref<32x32xf32, #tpu.memory_space<vmem>>, vector<32x32xf32>
      %cst_12 = arith.constant dense<0.000000e+00> : vector<8x32xf32>
      %12 = tpu.matmul %10, %11, %cst_12 {dimension_numbers = #tpu.dot_dimension_numbers<[1], [0], [0], [1], [0, 0, 1, 1], [], []>, precision = #tpu.contract_precision<fp32>} : vector<8x32xf32>, vector<32x32xf32>, vector<8x32xf32> -> vector<8x32xf32>
      %c0_13 = arith.constant 0 : index
      %c0_14 = arith.constant 0 : index
      %13 = vector.load %arg7[%c0_13, %c0_14] : memref<8x32xf32, #tpu.memory_space<vmem>>, vector<8x32xf32>
      tpu.vector_store %arg7[%c0_13, %c0_14], %12 {strides = array<i32>} : memref<8x32xf32, #tpu.memory_space<vmem>>, vector<8x32xf32>,
    } else {
    }
    %c0 = arith.constant 0 : index
    %c0_1 = arith.constant 0 : index
    %3 = vector.load %arg3[%c0, %c0_1] : memref<8x8xf32, #tpu.memory_space<vmem>>, vector<8x8xf32>
    %c0_2 = arith.constant 0 : index
    %c0_3 = arith.constant 0 : index
    %4 = vector.load %arg7[%c0_2, %c0_3] : memref<8x32xf32, #tpu.memory_space<vmem>>, vector<8x32xf32>
    %cst = arith.constant dense<0.000000e+00> : vector<8x32xf32>
    %5 = tpu.matmul %3, %4, %cst {dimension_numbers = #tpu.dot_dimension_numbers<[1], [0], [0], [1], [0, 0, 1, 1], [], []>, precision = #tpu.contract_precision<fp32>} : vector<8x8xf32>, vector<8x32xf32>, vector<8x32xf32> -> vector<8x32xf32>
    %c0_4 = arith.constant 0 : index
    %c0_5 = arith.constant 0 : index
    %6 = vector.load %arg5[%c0_4, %c0_5] : memref<1x32xf32, #tpu.memory_space<vmem>>, vector<1x32xf32>
    %7 = vector.broadcast %6 : vector<1x32xf32> to vector<8x32xf32>
    %8 = arith.addf %5, %7 : vector<8x32xf32>
    %c0_6 = arith.constant 0 : index
    %c0_7 = arith.constant 0 : index
    %9 = vector.load %arg6[%c0_6, %c0_7] : memref<8x32xf32, #tpu.memory_space<vmem>>, vector<8x32xf32>
    tpu.vector_store %arg6[%c0_6, %c0_7], %8 {strides = array<i32>} : memref<8x32xf32, #tpu.memory_space<vmem>>, vector<8x32xf32>,
    return
  }
  func.func @transform_0(%arg0: i32, %arg1: i32) -> (i32, i32) {
    %c0_i32 = arith.constant 0 : i32
    %c0_i32_0 = arith.constant 0 : i32
    return %arg0, %c0_i32 : i32, i32
  }
  func.func @transform_1(%arg0: i32, %arg1: i32) -> (i32, i32) {
    %c0_i32 = arith.constant 0 : i32
    %c0_i32_0 = arith.constant 0 : i32
    return %arg1, %c0_i32 : i32, i32
  }
  func.func @transform_2(%arg0: i32, %arg1: i32) -> (i32, i32) {
    %c0_i32 = arith.constant 0 : i32
    %c0_i32_0 = arith.constant 0 : i32
    %c0_i32_1 = arith.constant 0 : i32
    return %c0_i32, %c0_i32_0 : i32, i32
  }
  func.func @transform_3(%arg0: i32, %arg1: i32) -> (i32, i32) {
    %c0_i32 = arith.constant 0 : i32
    %c0_i32_0 = arith.constant 0 : i32
    %c0_i32_1 = arith.constant 0 : i32
    return %c0_i32, %c0_i32_0 : i32, i32
  }
  func.func @transform_4(%arg0: i32, %arg1: i32) -> (i32, i32) {
    %c1_i32 = arith.constant 1 : i32
    %0 = arith.muli %arg0, %c1_i32 : i32
    %1 = arith.addi %0, %arg1 : i32
    %c0_i32 = arith.constant 0 : i32
    %c0_i32_0 = arith.constant 0 : i32
    return %1, %c0_i32 : i32, i32
  }
}

</mosaic_0001>

<bundles_post_ra>
// kernel: cmha_forward.1
= control target key start
LH: loop header
LB: loop body
LE: loop exit
PB: predicated region body
PF: predicated region fallthrough
CT: control target
= control target key end

     0   :  { %9 = vsyncpa [#allocation4], 0  ;;  %s1832_s0 = inlined_call_operand.vmem [shape: f32[16,32], index: 0, kind: input, shape index: {}]   ;;  %s1833_s1 = inlined_call_operand.vmem [shape: f32[8,8], index: 1, kind: input, shape index: {}]   ;;  %s1834_s2 = inlined_call_operand.vmem [shape: f32[32,32], index: 2, kind: input, shape index: {}]   ;;  %s1835_s3 = inlined_call_operand.vmem [shape: f32[1,32], index: 3, kind: input, shape index: {}]   ;;  %s1836_s4 = inlined_call_operand.hbm [shape: f32[16,32], index: 4, kind: output, shape index: {}]  }
   0x1   :  { %11 = vsyncpa [#allocation4 + $0x1], 0  ;;  %s1657_s15 = smov 0   ;;  %s1659_s16 = smov 0  }
   0x2   :  { %s1661_s17 = smov 0   ;;  %s1663_s18 = smov 0  }
   0x3   :  { %s1665_s19 = smov 0   ;;  %s1667_s20 = smov 0  }
   0x4 LB: > { %s1283_s21 = sadd.s32 4294967295, %s1626_s20   ;;  %s1284_s22 = sadd.s32 4294967294, %s1626_s20   ;;  %s1626_s20 = sphi %s1667_s20, %s17_s20   ;;  %s1622_s19 = sphi %s1665_s19, %s1843_s19   ;;  %s1618_s18 = sphi %s1663_s18, %s1842_s18   ;;  %s1614_s17 = sphi %s1661_s17, %s1841_s17   ;;  %s1610_s16 = sphi %s1659_s16, %s1840_s16   ;;  %s1606_s15 = sphi %s1657_s15, %s1839_s15  }
   0x5   : > { %s29_s23 = sadd.s32 1, %s1622_s19  ;;  %s132_s24 = sadd.s32 1, %s1614_s17 }
   0x6   : > { %p31_p0 = scmp.ge.s32.totalorder %s29_s23, 2  ;;  %p142_p1 = scmp.ne.s32.totalorder %s1614_s17, %s1610_s16 }
   0x7   : > { %p143_p2 = scmp.eq.s32.totalorder %s1283_s21, 1  ;;  %p148_p3 = scmp.ne.s32.totalorder %s1610_s16, %s1606_s15 }
   0x8   : > { %s1845_s23 = smov (%p31_p0, %s29_s23), 0  ;;  %p149_p5 = scmp.eq.s32.totalorder %s1284_s22, 1 }
   0x9   : > { %p1697_p4 = por %p143_p2, %p142_p1  ;;  %s129_s26 = ssub.s32 %s1622_s19, %s1845_s23 }
   0xa   : > { %p1288_p6 = scmp.ge.s32.totalorder %s1626_s20, 1  ;;  %p130_p7 = scmp.eq.s32.totalorder %s129_s26, 0 }
   0xb   : > { %p1704_p8 = por %p149_p5, %p148_p3  ;;  %p187_p9 = scmp.lt.s32.totalorder %s1626_s20, 3 }
   0xc   : > { %s1710_s28 = scalar_select %p130_p7, %s1614_s17, %s132_s24  }
   0xd   : > { %p188_p10 = pnand %p1288_p6, %p187_p9 }
   0xe   : > { %v230_v0 = vld [vmem:[%s1834_s2] sm:$0xff] (!%p188_p10)  ;;  %v231_v1 = vld [vmem:[%s1834_s2 + $0x8] sm:$0xff] (!%p188_p10)  ;;  %v232_v2 = vld [vmem:[%s1834_s2 + $0x10] sm:$0xff] (!%p188_p10)  ;;  %v1628_v3 = vmov (!%p188_p10), 0.0|0.0   ;;  %vm1629_vm0 = vmmov (!%p188_p10), 0   ;;  %v1630_v8 = vmov (!%p188_p10), 0.0  }
   0xf   : > { %191 = sbr.rel (%p188_p10) target bundleno = 559 (0x22f), region = 36  ;;  %1440 = vmatprep.subr.bf16.mxu0 (!%p188_p10), %v1628_v3  ;;  %v239_v4 = vand.u32 (!%p188_p10), 4294901760, %v230_v0  ;;  %v242_v5 = vand.u32 (!%p188_p10), 4294901760, %v231_v1  ;;  %v233_v6 = vld [vmem:[%s1834_s2 + $0x18] sm:$0xff] (!%p188_p10)  ;;  %v245_v7 = vand.u32 (!%p188_p10), 4294901760, %v232_v2  ;;  %1357 = vmatprep.mubr.msk.f32.mxu0 (!%p188_p10), %vm1629_vm0, %v1630_v8  ;;  %p216_p11 = scmp.lt.s32.totalorder (!%p188_p10), %s1618_s18, 1 }
  0x10   : > { %v248_v9 = vand.u32 (!%p188_p10), 4294901760, %v233_v6  ;;  %1434 = vmatprep.subr.bf16.mxu1 (!%p188_p10), %v1628_v3  ;;  %1346 = vmatprep.mubr.msk.f32.mxu1 (!%p188_p10), %vm1629_vm0, %v1630_v8  ;;  %vm234_vm1 = vcmask (!%p188_p10), 261120   ;;  %v724_v43 = vld [vmem:[%s1833_s1] sm:$0xff] (!%p188_p10)  ;;  %vm733_vm2 = vcmask (!%p188_p10), 64512   ;;  %s213_s26 = sand.u32 (!%p188_p10), 1, %s1610_s16   ;;  %s1293_s6 = sshll.u32 (!%p188_p10), %s1618_s18, 7 }
  0x11   : > { %v319_v10 = vsub.f32 (!%p188_p10), %v230_v0, %v239_v4  ;;  %v326_v11 = vsub.f32 (!%p188_p10), %v231_v1, %v242_v5  ;;  %v333_v12 = vsub.f32 (!%p188_p10), %v232_v2, %v245_v7  ;;  %v1435_v13 = vpack.c.bf16 (!%p188_p10), %v242_v5, %v239_v4  ;;  %s1289_s29 = sshll.u32 (!%p188_p10), %s213_s26, 3  ;;  %v1291_v59 = vld [vmem:[%s1835_s3] ss:$0 sm:$0xff] (!%p188_p10) }
  0x12   : > { %v340_v14 = vsub.f32 (!%p188_p10), %v233_v6, %v248_v9  ;;  %v1438_v23 = vpack.c.bf16 (!%p188_p10), %v248_v9, %v245_v7  ;;  %v735_v44 = vsel (!%p188_p10), %vm733_vm2, %v724_v43, 0  ;;  %s215_s7 = scalar_lea.vmem (!%p188_p10), [#allocation3], %s1289_s29 }
  0x13   : > { %v320_v15 = vand.u32 (!%p188_p10), 4294901760, %v319_v10  ;;  %v327_v16 = vand.u32 (!%p188_p10), 4294901760, %v326_v11  ;;  %v334_v17 = vand.u32 (!%p188_p10), 4294901760, %v333_v12  ;;  %1436 = vmatpush3.bf16.msra.mxu1 (!%p188_p10), %v1435_v13  ;;  %v1447_v36 = vpack.c.bf16 (!%p188_p10), %v326_v11, %v319_v10  ;;  %s1200_s8 = sshll.u32 (!%p188_p10), %s215_s7, 4  ;;  %s1786_s8 = int_to_ptr.vmem [resolvable:$true] %s1200_s8 }
  0x14   : > { %v341_v18 = vand.u32 (!%p188_p10), 4294901760, %v340_v14  ;;  %1437 = vmatprep.subr.bf16.mxu1 (!%p188_p10), %v1628_v3  ;;  %v1450_v38 = vpack.c.bf16 (!%p188_p10), %v340_v14, %v333_v12  ;;  %v803_v45 = vand.u32 (!%p188_p10), 4294901760, %v735_v44  ;;  %s1548_s13 = scalar_lea.vmem (!%p188_p10), %s1786_s8, 128 }
  0x15   : > { %v321_v19 = vsub.f32 (!%p188_p10), %v319_v10, %v320_v15  ;;  %v328_v20 = vsub.f32 (!%p188_p10), %v326_v11, %v327_v16  ;;  %v335_v21 = vsub.f32 (!%p188_p10), %v333_v12, %v334_v17  ;;  %v1459_v39 = vpack.c.bf16 (!%p188_p10), %v327_v16, %v320_v15  ;;  %p1549_p12 = scmp.ne.s32.totalorder (!%p188_p10), %s1786_s8, %s1548_s13 }
  0x16   : > { %s217_s11 = scalar_select %p216_p11, %s1618_s18, 1  ;;  %v342_v24 = vsub.f32 %v340_v14, %v341_v18  ;;  %v1462_v40 = vpack.c.bf16 %v341_v18, %v334_v17  ;;  %v804_v46 = vsub.f32 %v735_v44, %v803_v45 }
  0x17   : > { %v322_v26 = vand.u32 4294901760, %v321_v19  ;;  %v329_v27 = vand.u32 4294901760, %v328_v20  ;;  %v336_v28 = vand.u32 4294901760, %v335_v21  ;;  %1439 = vmatpush3.bf16.msra.mxu1 %v1438_v23  ;;  %p1550_p13 = pnand %p1549_p12, %p1697_p4  ;;  %s1631_s18 = smov [#allocation3]  }
  0x18   : > { %s1290_s12 = sshll.u32 %s217_s11, 3  ;;  %v343_v30 = vand.u32 4294901760, %v342_v24  ;;  %1404 = vmatprep.subr.mxu1 %v1630_v8  ;;  %v805_v50 = vand.u32 4294901760, %v804_v46  ;;  %s1784_s11 = scalar_lea.hbm %s1836_s4, %s1293_s6 }
  0x19   : > { %s219_s21 = scalar_lea.vmem %s1832_s0, %s1290_s12  ;;  %v1441_v31 = vpack.c.bf16 %v329_v27, %v322_v26  ;;  %s1186_s12 = scalar_lea.sflag [#allocation4], %s213_s26 }
  0x1a   : > { %v229_v22 = vld [vmem:[%s219_s21] sm:$0xff]  ;;  %v1444_v33 = vpack.c.bf16 %v343_v30, %v336_v28  ;;  %v806_v51 = vsub.f32 %v804_v46, %v805_v50  ;;  %p1551_p0 = pneg %p1550_p13  ;;  %s1552_s14 = sshll.u32 %s1631_s18, 4  ;;  %s1553_s14 = int_to_ptr.vmem [resolvable:$false] %s1552_s14 }
  0x1b   : > { %v236_v25 = vsel %vm234_vm1, %v229_v22, 0  ;;  %1442 = vmatpush3.bf16.msra.mxu0 %v1441_v31  ;;  %s1554_s21 = scalar_lea.vmem %s1553_s14, 256  ;;  %p1555_p1 = scmp.lt.s32.totalorder %s1786_s8, %s1553_s14 }
  0x1c   : > { %v307_v29 = vand.u32 4294901760, %v236_v25  ;;  %1443 = vmatprep.subr.bf16.mxu0 %v1628_v3  ;;  %v807_v53 = vand.u32 4294901760, %v806_v51  ;;  %p1556_p2 = scmp.lt.s32.totalorder %s1554_s21, %s1548_s13 }
  0x1e   : > { %v308_v32 = vsub.f32 %v236_v25, %v307_v29  ;;  %p1557_p3 = por %p1556_p2, %p1555_p1 }
  0x1f   : > { %1445 = vmatpush3.bf16.msra.mxu0 %v1444_v33 }
  0x20   : > { %v309_v34 = vand.u32 4294901760, %v308_v32  ;;  %1446 = vmatprep.subr.bf16.mxu0 %v1628_v3  ;;  %p1558_p5 = pnand %p1557_p3, %p1551_p0 }
  0x22   : > { %v310_v35 = vsub.f32 %v308_v32, %v309_v34  ;;  %1358 = vmatmul.mubr.f32.vlgmr.msra.gmra.mrb[0].mxu0 %v307_v29 }
  0x23   : > { %1448 = vmatpush3.bf16.msra.mxu0 %v1447_v36  ;;  %1368 = vmatprep.mubr.msk.f32.mxu0 %vm1629_vm0, %v1630_v8 }
  0x24   : > { %v311_v37 = vand.u32 4294901760, %v310_v35  ;;  %1449 = vmatprep.subr.bf16.mxu0 %v1628_v3 }
  0x26   : > { %1347 = vmatmul.mubr.f32.vlgmr.msra.gmra.mrb[0].mxu1 %v311_v37 }
  0x27   : > { %1406 = vmatprep.mubr.msk.f32.mxu1 %vm1629_vm0, %v1630_v8  ;;  %1451 = vmatpush3.bf16.msra.mxu0 %v1450_v38 }
  0x28   : > { %1452 = vmatprep.subr.bf16.mxu0 %v1628_v3 }
  0x2a   : > { %1369 = vmatmul.mubr.f32.vlgmr.msra.gmra.mrb[0].mxu0 %v308_v32 }
  0x2b   : > { %1454 = vmatpush3.bf16.msra.mxu0 %v1435_v13  ;;  %1379 = vmatprep.mubr.msk.f32.mxu0 %vm1629_vm0, %v1630_v8 }
  0x2c   : > { %1455 = vmatprep.subr.bf16.mxu0 %v1628_v3 }
  0x2f   : > { %1457 = vmatpush3.bf16.msra.mxu0 %v1438_v23 }
  0x30   : > { %1458 = vmatprep.subr.bf16.mxu0 %v1628_v3 }
  0x32   : > { %1380 = vmatmul.mubr.f32.vlgmr.msra.gmra.mrb[0].mxu0 %v309_v34 }
  0x33   : > { %1460 = vmatpush3.bf16.msra.mxu0 %v1459_v39  ;;  %1390 = vmatprep.mubr.msk.f32.mxu0 %vm1629_vm0, %v1630_v8 }
  0x34   : > { %1461 = vmatprep.subr.bf16.mxu0 %v1628_v3 }
  0x37   : > { %1463 = vmatpush3.bf16.msra.mxu0 %v1462_v40 }
  0x38   : > { %1464 = vmatprep.subr.bf16.mxu0 %v1628_v3 }
  0x3a   : > { %1391 = vmatmul.mubr.f32.vlgmr.msra.gmra.mrb[0].mxu0 %v307_v29 }
  0x3b   : > { %1466 = vmatpush3.bf16.msra.mxu0 %v1435_v13  ;;  %1401 = vmatprep.mubr.msk.f32.mxu0 %vm1629_vm0, %v1630_v8 }
  0x3c   : > { %1467 = vmatprep.subr.bf16.mxu0 %v1628_v3 }
  0x3f   : > { %1469 = vmatpush3.bf16.msra.mxu0 %v1438_v23 }
  0x42   : > { %1402 = vmatmul.mubr.f32.vlgmr.msra.gmra.mrb[0].mxu0 %v307_v29 }
  0xf9   : > { %v313_v41 = vpop.f32.mrb[0].mxu1 }
  0xfa   : > { %v1348_v42 = vpop.f32.mrb[1].mxu1 }
 0x115   : > { %v719_v47 = vpop.f32.mrb[0].mxu0 }
 0x116   : > { %v1470_v48 = vadd.f32 %v719_v47, %v313_v41  ;;  %v1403_v49 = vpop.f32.mrb[1].mxu0 }
 0x118   : > { %723 = vst.msk [vmem:[#allocation2] sm:$0xff] %vm234_vm1, %v1470_v48 }
 0x11f   : > { %v725_v52 = vld [vmem:[#allocation2] sm:$0xff] }
 0x120   : > { %v738_v54 = vand.u32 4294901760, %v725_v52 }
 0x122   : > { %1405 = vmatpush3.msra.mxu1 %v738_v54  ;;  %v815_v55 = vsub.f32 %v725_v52, %v738_v54 }
 0x123   : > { %1407 = vmatmul.mubr.f32.vlgmr.msra.gmra.mrb[2].mxu1 %v807_v53  ;;  %1409 = vmatprep.subr.mxu1 %v1630_v8 }
 0x124   : > { %v816_v56 = vand.u32 4294901760, %v815_v55  ;;  %1411 = vmatprep.mubr.msk.f32.mxu1 %vm1629_vm0, %v1630_v8 }
 0x126   : > { %v817_v57 = vsub.f32 %v815_v55, %v816_v56 }
 0x128   : > { %v818_v58 = vand.u32 4294901760, %v817_v57 }
 0x12a   : > { %1410 = vmatpush3.msra.mxu1 %v818_v58 }
 0x12b   : > { %1412 = vmatmul.mubr.f32.vlgmr.msra.gmra.mrb[2].mxu1 %v803_v45  ;;  %1414 = vmatprep.subr.mxu1 %v1630_v8 }
 0x12c   : > { %1415 = vmatpush3.msra.mxu1 %v815_v55  ;;  %1416 = vmatprep.mubr.msk.f32.mxu1 %vm1629_vm0, %v1630_v8 }
 0x12d   : > { %1419 = vmatprep.subr.mxu1 %v1630_v8 }
 0x133   : > { %1417 = vmatmul.mubr.f32.vlgmr.msra.gmra.mrb[2].mxu1 %v804_v46 }
 0x134   : > { %1420 = vmatpush3.msra.mxu1 %v738_v54  ;;  %1421 = vmatprep.mubr.msk.f32.mxu1 %vm1629_vm0, %v1630_v8 }
 0x135   : > { %1424 = vmatprep.subr.mxu1 %v1630_v8 }
 0x13b   : > { %1422 = vmatmul.mubr.f32.vlgmr.msra.gmra.mrb[2].mxu1 %v805_v50 }
 0x13c   : > { %1425 = vmatpush3.msra.mxu1 %v816_v56  ;;  %1426 = vmatprep.mubr.msk.f32.mxu1 %vm1629_vm0, %v1630_v8 }
 0x13d   : > { %1429 = vmatprep.subr.mxu1 %v1630_v8 }
 0x143   : > { %1427 = vmatmul.mubr.f32.vlgmr.msra.gmra.mrb[2].mxu1 %v803_v45 }
 0x144   : > { %1430 = vmatpush3.msra.mxu1 %v738_v54  ;;  %1431 = vmatprep.mubr.msk.f32.mxu1 %vm1629_vm0, %v1630_v8 }
 0x14b   : > { %1432 = vmatmul.mubr.f32.vlgmr.msra.gmra.mrb[2].mxu1 %v803_v45 }
 0x21e   : > { %v1179_v60 = vpop.f32.mrb[2].mxu1 }
 0x21f   : > { %v1471_v61 = vadd.f32 %v1291_v59, %v1179_v60  ;;  %v1433_v62 = vpop.f32.mrb[3].mxu1 }
 0x221   : > { %1184 = vst.msk [vmem:[%s215_s7] sm:$0xff] %vm234_vm1, %v1471_v61 }
 0x222   : > { %1561 = shalt.err (!%p1558_p5)
}
 0x223   : > { %s1562_s22 = scalar_lea.hbm %s1784_s11, 128  ;;  %s1566_s29 = scalar_lea.hbm %s1836_s4, 256 }
 0x224   : > { %p1563_p6 = scmp.ne.s32.totalorder %s1784_s11, %s1562_s22  ;;  %p1567_p10 = scmp.lt.u32.totalorder %s1784_s11, %s1836_s4 }
 0x225   : > { %p1568_p11 = scmp.lt.u32.totalorder %s1566_s29, %s1562_s22  ;;  %p1570_p13 = scmp.lt.u32.totalorder %s1562_s22, %s1784_s11 }
 0x226   : > { %p1564_p7 = pnand %p1563_p6, %p1697_p4 }
 0x227   : > { %p1569_p12 = por %p1568_p11, %p1567_p10 }
 0x228   : > { %p1565_p9 = pneg %p1564_p7 }
 0x229   : > { %p1571_p0 = por %p1570_p13, %p1569_p12 }
 0x22b   : > { %p1572_p1 = pnand %p1571_p0, %p1565_p9 }
 0x22d   : > { %1575 = shalt.err (!%p1572_p1)
}
 0x22e   : > { %1490 = dma.vmem_to_hbm [thread:$0]  (%p1697_p4), %s1786_s8, 128, %s1784_s11, %s1186_s12  }
 0x22f PF: > { %p1496_p2 = scmp.ge.s32.totalorder %s1626_s20, 2  ;;  %s1212_s6 = sand.u32 1, %s1606_s15  }
 0x230   : > { %s1213_s7 = scalar_lea.sflag [#allocation4], %s1212_s6 }
 0x231   : > { %p1493_p3 = pnand %p1496_p2, %p1704_p8 }
 0x233   : > { %1601 = dma.done.wait (!%p1493_p3), %s1213_s7, 128  }
 0x234   : > { %1603 = vsyncadd (!%p1493_p3), %s1213_s7, 4294967168  ;;  %s17_s20 = sadd.s32 1, %s1626_s20   ;;  %s1839_s15 = smov %s1610_s16 }
 0x235   : > { %p14_p5 = scmp.ge.s32.totalorder %s17_s20, 4   ;;  %s1840_s16 = smov %s1614_s17 }
 0x236   : > { %s1841_s17 = smov %s1710_s28  ;;  %s1842_s18 = smov %s1622_s19 }
 0x237   : > { %s1843_s19 = smov %s1845_s23  ;;  %16 = sbr.rel (!%p14_p5) target bundleno = 4 (0x4), region = 78 }
 0x23e   :  { %1218 = vsyncpa [#allocation4], 1 }
 0x23f   :  { %1220 = vsyncpa [#allocation4 + $0x1], 1 }

</bundles_post_ra>
